<compile_context>
chip_gen: v6e
topology: v6e:2x2x1
jax: 0.10.0
libtpu: 0.0.40
codegen_flags: <defaults>
</compile_context>

<pallas_src>
import functools
import math

import jax
import jax.numpy as jnp
from jax.experimental import pallas as pl
from jax.experimental.pallas import tpu as pltpu


def _mha_kernel(q_ref, k_ref, v_ref, wqkv_ref, bqkv_ref, wo_ref, bo_ref,
                o_ref, merged_ref, *, num_heads, scale, approx_recip):
    H = num_heads
    _, _, D = q_ref.shape
    d_k = D // H
    cdt = wqkv_ref.dtype                      # MXU compute dtype (bf16)
    f32 = jnp.float32

    # --- Full-width input projections: one (rows, D) @ (D, D) matmul each. ---
    q = jnp.dot(q_ref[0].astype(cdt), wqkv_ref[0], preferred_element_type=f32)
    q = (q + bqkv_ref[0]) * scale                         # (TQ, D) f32, scaled
    k = jnp.dot(k_ref[0].astype(cdt), wqkv_ref[1], preferred_element_type=f32)
    k = k + bqkv_ref[1]                                   # (S, D) f32
    v = jnp.dot(v_ref[0].astype(cdt), wqkv_ref[2], preferred_element_type=f32)
    v = v + bqkv_ref[2]                                   # (S, D) f32

    # --- Per-head attention; merged context written straight into the (TQ, D)
    # scratch so the output projection below is a single full-width matmul. ---
    # TODO(synk): optional `mask` argument (mask=None path implemented here).
    for h in range(H):
        sl = slice(h * d_k, (h + 1) * d_k)
        s = jnp.einsum('qd,kd->qk', q[:, sl].astype(cdt), k[:, sl].astype(cdt),
                       preferred_element_type=f32)        # (TQ, S)
        m = jnp.max(s, axis=-1, keepdims=True)
        e = jnp.exp(s - m)
        l = jnp.sum(e, axis=-1, keepdims=True)            # (TQ, 1)
        c = jnp.dot(e.astype(cdt), v[:, sl].astype(cdt),
                    preferred_element_type=f32)           # (TQ, d_k)
        # Normalise after PV: S/d_k x fewer elementwise ops than scaling probs.
        merged_ref[:, sl] = c * pl.reciprocal(l, approx=approx_recip)

    # --- Head merge + output projection: one (TQ, D) @ (D, D) matmul. ---
    out = jnp.dot(merged_ref[...].astype(cdt), wo_ref[...],
                  preferred_element_type=f32) + bo_ref[...]
    o_ref[0] = out.astype(o_ref.dtype)


def multi_head_attention(Q, K, V, params, *, num_heads, mask=None,
                         block_q=256, compute_dtype=jnp.bfloat16,
                         approx_recip=True):
    """Pallas MHA forward. Q/K/V: (B, S, D) float32; `params` hold torch-style
    (out, in) weights and (out,) biases for W_q/W_k/W_v/W_o.

    `approx_recip=True` uses the EUP approximate reciprocal for the softmax
    denominator (rows of the implied probabilities sum to 1 only approximately);
    set False for exact division (e.g. training-grade numerics).
    """
    if mask is not None:
        # TODO(synk): masked / causal attention path not implemented.
        raise NotImplementedError("mask is not supported by this kernel yet")

    B, S, D = Q.shape
    assert D % num_heads == 0, "d_model must be divisible by num_heads"
    d_k = D // num_heads
    scale = 1.0 / math.sqrt(d_k)

    tq = S if S <= block_q else block_q
    assert S % tq == 0, "seq len must be a multiple of block_q when tiled"
    num_q_tiles = S // tq

    # torch nn.Linear: y = x @ W.T + b with W of shape (out, in) -> pass W.T.
    # Column (output-feature) order already matches the .view(B, S, H, d_k) head
    # split, so per-head lane slices in the kernel need no re-permutation.
    w_qkv = jnp.stack([params["W_q"]["w"].T, params["W_k"]["w"].T,
                       params["W_v"]["w"].T]).astype(compute_dtype)   # (3, D, D)
    b_qkv = jnp.stack([params["W_q"]["b"], params["W_k"]["b"],
                       params["W_v"]["b"]]).reshape(3, 1, D).astype(jnp.float32)
    w_o = params["W_o"]["w"].T.astype(compute_dtype)                  # (D, D)
    b_o = params["W_o"]["b"].reshape(1, D).astype(jnp.float32)

    # VMEM budget: double-buffered blocks + weights + live intermediates, with
    # ~50% headroom (the scoped defaults of 16/32 MiB are far below physical).
    f32b, bf16b = 4, 2
    est = (2 * f32b * (tq * D + 2 * S * D)            # q/k/v input blocks (x2 buffers)
           + 2 * f32b * tq * D                        # output block (x2 buffers)
           + 2 * bf16b * 4 * D * D                    # weights (x2 buffers)
           + f32b * tq * D                            # merged scratch
           + f32b * (tq * D + 2 * S * D)              # f32 projections
           + 3 * f32b * tq * S                        # scores / exp temporaries
           + bf16b * (tq * S + tq * D + 3 * S * D))   # bf16 casts
    vmem_limit = int(min(max(est * 1.5, 32 * 1024 * 1024), 128 * 1024 * 1024))

    kernel = functools.partial(_mha_kernel, num_heads=num_heads, scale=scale,
                               approx_recip=approx_recip)

    q_spec = pl.BlockSpec((1, tq, D), lambda b, qi: (b, qi, 0))
    kv_spec = pl.BlockSpec((1, S, D), lambda b, qi: (b, 0, 0))
    # TODO(synk): weight blocks are grid-constant; single-buffering them
    # (pl.Buffered(1) / persistent-VMEM manual DMA) would halve their footprint
    # on VMEM-tight chips (v7x).
    wqkv_spec = pl.BlockSpec((3, D, D), lambda b, qi: (0, 0, 0))
    bqkv_spec = pl.BlockSpec((3, 1, D), lambda b, qi: (0, 0, 0))
    wo_spec = pl.BlockSpec((D, D), lambda b, qi: (0, 0))
    bo_spec = pl.BlockSpec((1, D), lambda b, qi: (0, 0))
    out_spec = pl.BlockSpec((1, tq, D), lambda b, qi: (b, qi, 0))

    return pl.pallas_call(
        kernel,
        out_shape=jax.ShapeDtypeStruct((B, S, D), Q.dtype),
        grid_spec=pltpu.PrefetchScalarGridSpec(
            num_scalar_prefetch=0,
            grid=(B, num_q_tiles),
            in_specs=[q_spec, kv_spec, kv_spec,
                      wqkv_spec, bqkv_spec, wo_spec, bo_spec],
            out_specs=out_spec,
            scratch_shapes=[pltpu.VMEM((tq, D), jnp.float32)],
        ),
        compiler_params=pltpu.CompilerParams(
            dimension_semantics=("parallel", "parallel"),
            vmem_limit_bytes=vmem_limit),
    )(Q, K, V, w_qkv, b_qkv, w_o, b_o)


def _init_linear(key, d_in, d_out):
    # Deterministic init mimicking nn.Linear default (uniform +/- 1/sqrt(fan_in)).
    kw, kb = jax.random.split(key)
    bound = 1.0 / math.sqrt(d_in)
    w = jax.random.uniform(kw, (d_out, d_in), jnp.float32, -bound, bound)
    b = jax.random.uniform(kb, (d_out,), jnp.float32, -bound, bound)
    return {"w": w, "b": b}


def _reference_mha(Q, K, V, params, *, num_heads):
    B, S, D = Q.shape
    d_k = D // num_heads

    def lin(x, p):
        return x @ p["w"].T + p["b"]

    def split(x):  # (B, S, D) -> (B, H, S, d_k)
        return x.reshape(B, S, num_heads, d_k).transpose(0, 2, 1, 3)

    q = split(lin(Q, params["W_q"]))
    k = split(lin(K, params["W_k"]))
    v = split(lin(V, params["W_v"]))
    scores = jnp.einsum("bhqd,bhkd->bhqk", q, k) / math.sqrt(d_k)
    probs = jax.nn.softmax(scores, axis=-1)
    out = jnp.einsum("bhqk,bhkd->bhqd", probs, v)
    out = out.transpose(0, 2, 1, 3).reshape(B, S, D)
    return lin(out, params["W_o"])


if __name__ == "__main__":
    B, S, D, H = 2, 8, 32, 4

    key = jax.random.PRNGKey(0)
    kq, kk, kv, kwq, kwk, kwv, kwo = jax.random.split(key, 7)

    Q = jax.random.normal(kq, (B, S, D), jnp.float32)
    K = jax.random.normal(kk, (B, S, D), jnp.float32)
    V = jax.random.normal(kv, (B, S, D), jnp.float32)

    params = {
        "W_q": _init_linear(kwq, D, D),
        "W_k": _init_linear(kwk, D, D),
        "W_v": _init_linear(kwv, D, D),
        "W_o": _init_linear(kwo, D, D),
    }

    out = multi_head_attention(Q, K, V, params, num_heads=H)
    out = jax.block_until_ready(out)

    ref = _reference_mha(Q, K, V, params, num_heads=H)
    assert out.shape == (B, S, D)
    # bf16 MXU operands (f32 accumulation, f32 softmax stats) vs pure-f32
    # reference: relaxed tolerance; structural bugs would show errors >> 3e-2.
    assert jnp.allclose(out, ref, atol=3e-2, rtol=3e-2), "mismatch vs reference"

    print("KERNEL_OK")
</pallas_src>

<mosaic_0001>
module attributes {stable_mosaic.version = 11 : i64} {
  func.func @_mha_kernel(%arg0: i32, %arg1: i32, %arg2: memref<1x8x32xf32, #tpu.memory_space<vmem>>, %arg3: memref<1x8x32xf32, #tpu.memory_space<vmem>>, %arg4: memref<1x8x32xf32, #tpu.memory_space<vmem>>, %arg5: memref<3x32x32xbf16, #tpu.memory_space<vmem>>, %arg6: memref<3x1x32xf32, #tpu.memory_space<vmem>>, %arg7: memref<32x32xbf16, #tpu.memory_space<vmem>>, %arg8: memref<1x32xf32, #tpu.memory_space<vmem>>, %arg9: memref<1x8x32xf32, #tpu.memory_space<vmem>>, %arg10: memref<8x32xf32, #tpu.memory_space<vmem>>) attributes {dimension_semantics = [#tpu.dimension_semantics<parallel>, #tpu.dimension_semantics<parallel>], iteration_bounds = array<i64: 2, 1>, scalar_prefetch = 0 : i64, scratch_operands = 1 : i64, tpu.core_type = #tpu.core_type<tc>, window_params = [{transform_indices = @transform_0, window_bounds = array<i64: 1, 8, 32>}, {transform_indices = @transform_1, window_bounds = array<i64: 1, 8, 32>}, {transform_indices = @transform_2, window_bounds = array<i64: 1, 8, 32>}, {pipeline_mode = #tpu.pipeline_mode<synchronous>, transform_indices = @transform_3, window_bounds = array<i64: 3, 32, 32>}, {pipeline_mode = #tpu.pipeline_mode<synchronous>, transform_indices = @transform_4, window_bounds = array<i64: 3, 1, 32>}, {pipeline_mode = #tpu.pipeline_mode<synchronous>, transform_indices = @transform_5, window_bounds = array<i64: 32, 32>}, {pipeline_mode = #tpu.pipeline_mode<synchronous>, transform_indices = @transform_6, window_bounds = array<i64: 1, 32>}, {transform_indices = @transform_7, window_bounds = array<i64: 1, 8, 32>}]} {
    %c0 = arith.constant 0 : index
    %c0_0 = arith.constant 0 : index
    %c0_1 = arith.constant 0 : index
    %0 = vector.load %arg2[%c0, %c0_0, %c0_1] : memref<1x8x32xf32, #tpu.memory_space<vmem>>, vector<1x8x32xf32>
    %1 = vector.shape_cast %0 : vector<1x8x32xf32> to vector<8x32xf32>
    %2 = arith.truncf %1 : vector<8x32xf32> to vector<8x32xbf16>
    %c0_2 = arith.constant 0 : index
    %c0_3 = arith.constant 0 : index
    %c0_4 = arith.constant 0 : index
    %3 = vector.load %arg5[%c0_2, %c0_3, %c0_4] : memref<3x32x32xbf16, #tpu.memory_space<vmem>>, vector<1x32x32xbf16>
    %4 = vector.shape_cast %3 : vector<1x32x32xbf16> to vector<32x32xbf16>
    %cst = arith.constant dense<0.000000e+00> : vector<8x32xf32>
    %5 = tpu.matmul %2, %4, %cst {dimension_numbers = #tpu.dot_dimension_numbers<[1], [0], [0], [1], [0, 0, 1, 1], [], []>} : vector<8x32xbf16>, vector<32x32xbf16>, vector<8x32xf32> -> vector<8x32xf32>
    %c0_5 = arith.constant 0 : index
    %c0_6 = arith.constant 0 : index
    %c0_7 = arith.constant 0 : index
    %6 = vector.load %arg6[%c0_5, %c0_6, %c0_7] : memref<3x1x32xf32, #tpu.memory_space<vmem>>, vector<1x1x32xf32>
    %7 = vector.shape_cast %6 : vector<1x1x32xf32> to vector<1x32xf32>
    %8 = vector.broadcast %7 : vector<1x32xf32> to vector<8x32xf32>
    %9 = arith.addf %5, %8 : vector<8x32xf32>
    %cst_8 = arith.constant 0.353553385 : f32
    %10 = vector.broadcast %cst_8 : f32 to vector<8x32xf32>
    %11 = arith.mulf %9, %10 : vector<8x32xf32>
    %c0_9 = arith.constant 0 : index
    %c0_10 = arith.constant 0 : index
    %c0_11 = arith.constant 0 : index
    %12 = vector.load %arg3[%c0_9, %c0_10, %c0_11] : memref<1x8x32xf32, #tpu.memory_space<vmem>>, vector<1x8x32xf32>
    %13 = vector.shape_cast %12 : vector<1x8x32xf32> to vector<8x32xf32>
    %14 = arith.truncf %13 : vector<8x32xf32> to vector<8x32xbf16>
    %c1 = arith.constant 1 : index
    %c0_12 = arith.constant 0 : index
    %c0_13 = arith.constant 0 : index
    %15 = vector.load %arg5[%c1, %c0_12, %c0_13] : memref<3x32x32xbf16, #tpu.memory_space<vmem>>, vector<1x32x32xbf16>
    %16 = vector.shape_cast %15 : vector<1x32x32xbf16> to vector<32x32xbf16>
    %cst_14 = arith.constant dense<0.000000e+00> : vector<8x32xf32>
    %17 = tpu.matmul %14, %16, %cst_14 {dimension_numbers = #tpu.dot_dimension_numbers<[1], [0], [0], [1], [0, 0, 1, 1], [], []>} : vector<8x32xbf16>, vector<32x32xbf16>, vector<8x32xf32> -> vector<8x32xf32>
    %c1_15 = arith.constant 1 : index
    %c0_16 = arith.constant 0 : index
    %c0_17 = arith.constant 0 : index
    %18 = vector.load %arg6[%c1_15, %c0_16, %c0_17] : memref<3x1x32xf32, #tpu.memory_space<vmem>>, vector<1x1x32xf32>
    %19 = vector.shape_cast %18 : vector<1x1x32xf32> to vector<1x32xf32>
    %20 = vector.broadcast %19 : vector<1x32xf32> to vector<8x32xf32>
    %21 = arith.addf %17, %20 : vector<8x32xf32>
    %c0_18 = arith.constant 0 : index
    %c0_19 = arith.constant 0 : index
    %c0_20 = arith.constant 0 : index
    %22 = vector.load %arg4[%c0_18, %c0_19, %c0_20] : memref<1x8x32xf32, #tpu.memory_space<vmem>>, vector<1x8x32xf32>
    %23 = vector.shape_cast %22 : vector<1x8x32xf32> to vector<8x32xf32>
    %24 = arith.truncf %23 : vector<8x32xf32> to vector<8x32xbf16>
    %c2 = arith.constant 2 : index
    %c0_21 = arith.constant 0 : index
    %c0_22 = arith.constant 0 : index
    %25 = vector.load %arg5[%c2, %c0_21, %c0_22] : memref<3x32x32xbf16, #tpu.memory_space<vmem>>, vector<1x32x32xbf16>
    %26 = vector.shape_cast %25 : vector<1x32x32xbf16> to vector<32x32xbf16>
    %cst_23 = arith.constant dense<0.000000e+00> : vector<8x32xf32>
    %27 = tpu.matmul %24, %26, %cst_23 {dimension_numbers = #tpu.dot_dimension_numbers<[1], [0], [0], [1], [0, 0, 1, 1], [], []>} : vector<8x32xbf16>, vector<32x32xbf16>, vector<8x32xf32> -> vector<8x32xf32>
    %c2_24 = arith.constant 2 : index
    %c0_25 = arith.constant 0 : index
    %c0_26 = arith.constant 0 : index
    %28 = vector.load %arg6[%c2_24, %c0_25, %c0_26] : memref<3x1x32xf32, #tpu.memory_space<vmem>>, vector<1x1x32xf32>
    %29 = vector.shape_cast %28 : vector<1x1x32xf32> to vector<1x32xf32>
    %30 = vector.broadcast %29 : vector<1x32xf32> to vector<8x32xf32>
    %31 = arith.addf %27, %30 : vector<8x32xf32>
    %32 = vector.extract_strided_slice %11 {offsets = [0, 0], sizes = [8, 8], strides = [1, 1]} : vector<8x32xf32> to vector<8x8xf32>
    %33 = arith.truncf %32 : vector<8x8xf32> to vector<8x8xbf16>
    %34 = vector.extract_strided_slice %21 {offsets = [0, 0], sizes = [8, 8], strides = [1, 1]} : vector<8x32xf32> to vector<8x8xf32>
    %35 = arith.truncf %34 : vector<8x8xf32> to vector<8x8xbf16>
    "tpu.trace_start"() <{level = 10 : i32, message = "qd,kd->qk"}> : () -> ()
    %cst_27 = arith.constant dense<0.000000e+00> : vector<8x8xf32>
    %36 = tpu.matmul %33, %35, %cst_27 {dimension_numbers = #tpu.dot_dimension_numbers<[1], [1], [0], [0], [0, 0, 1, 0], [], []>} : vector<8x8xbf16>, vector<8x8xbf16>, vector<8x8xf32> -> vector<8x8xf32>
    "tpu.trace_stop"() : () -> ()
    %cst_28 = arith.constant dense<0xFF800000> : vector<8xf32>
    %37 = vector.multi_reduction <maximumf>, %36, %cst_28 [1] : vector<8x8xf32> to vector<8xf32>
    %38 = vector.shape_cast %37 : vector<8xf32> to vector<8x1xf32>
    %39 = vector.broadcast %38 : vector<8x1xf32> to vector<8x8xf32>
    %40 = arith.subf %36, %39 : vector<8x8xf32>
    %41 = math.exp %40 : vector<8x8xf32>
    %cst_29 = arith.constant dense<0.000000e+00> : vector<8xf32>
    %42 = vector.multi_reduction <add>, %41, %cst_29 [1] : vector<8x8xf32> to vector<8xf32>
    %43 = vector.shape_cast %42 : vector<8xf32> to vector<8x1xf32>
    %44 = arith.truncf %41 : vector<8x8xf32> to vector<8x8xbf16>
    %45 = vector.extract_strided_slice %31 {offsets = [0, 0], sizes = [8, 8], strides = [1, 1]} : vector<8x32xf32> to vector<8x8xf32>
    %46 = arith.truncf %45 : vector<8x8xf32> to vector<8x8xbf16>
    %cst_30 = arith.constant dense<0.000000e+00> : vector<8x8xf32>
    %47 = tpu.matmul %44, %46, %cst_30 {dimension_numbers = #tpu.dot_dimension_numbers<[1], [0], [0], [1], [0, 0, 1, 1], [], []>} : vector<8x8xbf16>, vector<8x8xbf16>, vector<8x8xf32> -> vector<8x8xf32>
    %48 = tpu.reciprocal %43 {approx = true} : vector<8x1xf32> -> vector<8x1xf32>
    %49 = vector.broadcast %48 : vector<8x1xf32> to vector<8x8xf32>
    %50 = arith.mulf %47, %49 : vector<8x8xf32>
    %c0_31 = arith.constant 0 : index
    %c0_32 = arith.constant 0 : index
    %51 = vector.load %arg10[%c0_31, %c0_32] : memref<8x32xf32, #tpu.memory_space<vmem>>, vector<8x8xf32>
    tpu.vector_store %arg10[%c0_31, %c0_32], %50 {strides = array<i32>} : memref<8x32xf32, #tpu.memory_space<vmem>>, vector<8x8xf32>,
    %52 = vector.extract_strided_slice %11 {offsets = [0, 8], sizes = [8, 8], strides = [1, 1]} : vector<8x32xf32> to vector<8x8xf32>
    %53 = arith.truncf %52 : vector<8x8xf32> to vector<8x8xbf16>
    %54 = vector.extract_strided_slice %21 {offsets = [0, 8], sizes = [8, 8], strides = [1, 1]} : vector<8x32xf32> to vector<8x8xf32>
    %55 = arith.truncf %54 : vector<8x8xf32> to vector<8x8xbf16>
    "tpu.trace_start"() <{level = 10 : i32, message = "qd,kd->qk"}> : () -> ()
    %cst_33 = arith.constant dense<0.000000e+00> : vector<8x8xf32>
    %56 = tpu.matmul %53, %55, %cst_33 {dimension_numbers = #tpu.dot_dimension_numbers<[1], [1], [0], [0], [0, 0, 1, 0], [], []>} : vector<8x8xbf16>, vector<8x8xbf16>, vector<8x8xf32> -> vector<8x8xf32>
    "tpu.trace_stop"() : () -> ()
    %cst_34 = arith.constant dense<0xFF800000> : vector<8xf32>
    %57 = vector.multi_reduction <maximumf>, %56, %cst_34 [1] : vector<8x8xf32> to vector<8xf32>
    %58 = vector.shape_cast %57 : vector<8xf32> to vector<8x1xf32>
    %59 = vector.broadcast %58 : vector<8x1xf32> to vector<8x8xf32>
    %60 = arith.subf %56, %59 : vector<8x8xf32>
    %61 = math.exp %60 : vector<8x8xf32>
    %cst_35 = arith.constant dense<0.000000e+00> : vector<8xf32>
    %62 = vector.multi_reduction <add>, %61, %cst_35 [1] : vector<8x8xf32> to vector<8xf32>
    %63 = vector.shape_cast %62 : vector<8xf32> to vector<8x1xf32>
    %64 = arith.truncf %61 : vector<8x8xf32> to vector<8x8xbf16>
    %65 = vector.extract_strided_slice %31 {offsets = [0, 8], sizes = [8, 8], strides = [1, 1]} : vector<8x32xf32> to vector<8x8xf32>
    %66 = arith.truncf %65 : vector<8x8xf32> to vector<8x8xbf16>
    %cst_36 = arith.constant dense<0.000000e+00> : vector<8x8xf32>
    %67 = tpu.matmul %64, %66, %cst_36 {dimension_numbers = #tpu.dot_dimension_numbers<[1], [0], [0], [1], [0, 0, 1, 1], [], []>} : vector<8x8xbf16>, vector<8x8xbf16>, vector<8x8xf32> -> vector<8x8xf32>
    %68 = tpu.reciprocal %63 {approx = true} : vector<8x1xf32> -> vector<8x1xf32>
    %69 = vector.broadcast %68 : vector<8x1xf32> to vector<8x8xf32>
    %70 = arith.mulf %67, %69 : vector<8x8xf32>
    %c0_37 = arith.constant 0 : index
    %c8 = arith.constant 8 : index
    %71 = vector.load %arg10[%c0_37, %c8] : memref<8x32xf32, #tpu.memory_space<vmem>>, vector<8x8xf32>
    tpu.vector_store %arg10[%c0_37, %c8], %70 {strides = array<i32>} : memref<8x32xf32, #tpu.memory_space<vmem>>, vector<8x8xf32>,
    %72 = vector.extract_strided_slice %11 {offsets = [0, 16], sizes = [8, 8], strides = [1, 1]} : vector<8x32xf32> to vector<8x8xf32>
    %73 = arith.truncf %72 : vector<8x8xf32> to vector<8x8xbf16>
    %74 = vector.extract_strided_slice %21 {offsets = [0, 16], sizes = [8, 8], strides = [1, 1]} : vector<8x32xf32> to vector<8x8xf32>
    %75 = arith.truncf %74 : vector<8x8xf32> to vector<8x8xbf16>
    "tpu.trace_start"() <{level = 10 : i32, message = "qd,kd->qk"}> : () -> ()
    %cst_38 = arith.constant dense<0.000000e+00> : vector<8x8xf32>
    %76 = tpu.matmul %73, %75, %cst_38 {dimension_numbers = #tpu.dot_dimension_numbers<[1], [1], [0], [0], [0, 0, 1, 0], [], []>} : vector<8x8xbf16>, vector<8x8xbf16>, vector<8x8xf32> -> vector<8x8xf32>
    "tpu.trace_stop"() : () -> ()
    %cst_39 = arith.constant dense<0xFF800000> : vector<8xf32>
    %77 = vector.multi_reduction <maximumf>, %76, %cst_39 [1] : vector<8x8xf32> to vector<8xf32>
    %78 = vector.shape_cast %77 : vector<8xf32> to vector<8x1xf32>
    %79 = vector.broadcast %78 : vector<8x1xf32> to vector<8x8xf32>
    %80 = arith.subf %76, %79 : vector<8x8xf32>
    %81 = math.exp %80 : vector<8x8xf32>
    %cst_40 = arith.constant dense<0.000000e+00> : vector<8xf32>
    %82 = vector.multi_reduction <add>, %81, %cst_40 [1] : vector<8x8xf32> to vector<8xf32>
    %83 = vector.shape_cast %82 : vector<8xf32> to vector<8x1xf32>
    %84 = arith.truncf %81 : vector<8x8xf32> to vector<8x8xbf16>
    %85 = vector.extract_strided_slice %31 {offsets = [0, 16], sizes = [8, 8], strides = [1, 1]} : vector<8x32xf32> to vector<8x8xf32>
    %86 = arith.truncf %85 : vector<8x8xf32> to vector<8x8xbf16>
    %cst_41 = arith.constant dense<0.000000e+00> : vector<8x8xf32>
    %87 = tpu.matmul %84, %86, %cst_41 {dimension_numbers = #tpu.dot_dimension_numbers<[1], [0], [0], [1], [0, 0, 1, 1], [], []>} : vector<8x8xbf16>, vector<8x8xbf16>, vector<8x8xf32> -> vector<8x8xf32>
    %88 = tpu.reciprocal %83 {approx = true} : vector<8x1xf32> -> vector<8x1xf32>
    %89 = vector.broadcast %88 : vector<8x1xf32> to vector<8x8xf32>
    %90 = arith.mulf %87, %89 : vector<8x8xf32>
    %c0_42 = arith.constant 0 : index
    %c16 = arith.constant 16 : index
    %91 = vector.load %arg10[%c0_42, %c16] : memref<8x32xf32, #tpu.memory_space<vmem>>, vector<8x8xf32>
    tpu.vector_store %arg10[%c0_42, %c16], %90 {strides = array<i32>} : memref<8x32xf32, #tpu.memory_space<vmem>>, vector<8x8xf32>,
    %92 = vector.extract_strided_slice %11 {offsets = [0, 24], sizes = [8, 8], strides = [1, 1]} : vector<8x32xf32> to vector<8x8xf32>
    %93 = arith.truncf %92 : vector<8x8xf32> to vector<8x8xbf16>
    %94 = vector.extract_strided_slice %21 {offsets = [0, 24], sizes = [8, 8], strides = [1, 1]} : vector<8x32xf32> to vector<8x8xf32>
    %95 = arith.truncf %94 : vector<8x8xf32> to vector<8x8xbf16>
    "tpu.trace_start"() <{level = 10 : i32, message = "qd,kd->qk"}> : () -> ()
    %cst_43 = arith.constant dense<0.000000e+00> : vector<8x8xf32>
    %96 = tpu.matmul %93, %95, %cst_43 {dimension_numbers = #tpu.dot_dimension_numbers<[1], [1], [0], [0], [0, 0, 1, 0], [], []>} : vector<8x8xbf16>, vector<8x8xbf16>, vector<8x8xf32> -> vector<8x8xf32>
    "tpu.trace_stop"() : () -> ()
    %cst_44 = arith.constant dense<0xFF800000> : vector<8xf32>
    %97 = vector.multi_reduction <maximumf>, %96, %cst_44 [1] : vector<8x8xf32> to vector<8xf32>
    %98 = vector.shape_cast %97 : vector<8xf32> to vector<8x1xf32>
    %99 = vector.broadcast %98 : vector<8x1xf32> to vector<8x8xf32>
    %100 = arith.subf %96, %99 : vector<8x8xf32>
    %101 = math.exp %100 : vector<8x8xf32>
    %cst_45 = arith.constant dense<0.000000e+00> : vector<8xf32>
    %102 = vector.multi_reduction <add>, %101, %cst_45 [1] : vector<8x8xf32> to vector<8xf32>
    %103 = vector.shape_cast %102 : vector<8xf32> to vector<8x1xf32>
    %104 = arith.truncf %101 : vector<8x8xf32> to vector<8x8xbf16>
    %105 = vector.extract_strided_slice %31 {offsets = [0, 24], sizes = [8, 8], strides = [1, 1]} : vector<8x32xf32> to vector<8x8xf32>
    %106 = arith.truncf %105 : vector<8x8xf32> to vector<8x8xbf16>
    %cst_46 = arith.constant dense<0.000000e+00> : vector<8x8xf32>
    %107 = tpu.matmul %104, %106, %cst_46 {dimension_numbers = #tpu.dot_dimension_numbers<[1], [0], [0], [1], [0, 0, 1, 1], [], []>} : vector<8x8xbf16>, vector<8x8xbf16>, vector<8x8xf32> -> vector<8x8xf32>
    %108 = tpu.reciprocal %103 {approx = true} : vector<8x1xf32> -> vector<8x1xf32>
    %109 = vector.broadcast %108 : vector<8x1xf32> to vector<8x8xf32>
    %110 = arith.mulf %107, %109 : vector<8x8xf32>
    %c0_47 = arith.constant 0 : index
    %c24 = arith.constant 24 : index
    %111 = vector.load %arg10[%c0_47, %c24] : memref<8x32xf32, #tpu.memory_space<vmem>>, vector<8x8xf32>
    tpu.vector_store %arg10[%c0_47, %c24], %110 {strides = array<i32>} : memref<8x32xf32, #tpu.memory_space<vmem>>, vector<8x8xf32>,
    %c0_48 = arith.constant 0 : index
    %c0_49 = arith.constant 0 : index
    %112 = vector.load %arg10[%c0_48, %c0_49] : memref<8x32xf32, #tpu.memory_space<vmem>>, vector<8x32xf32>
    %113 = arith.truncf %112 : vector<8x32xf32> to vector<8x32xbf16>
    %c0_50 = arith.constant 0 : index
    %c0_51 = arith.constant 0 : index
    %114 = vector.load %arg7[%c0_50, %c0_51] : memref<32x32xbf16, #tpu.memory_space<vmem>>, vector<32x32xbf16>
    %cst_52 = arith.constant dense<0.000000e+00> : vector<8x32xf32>
    %115 = tpu.matmul %113, %114, %cst_52 {dimension_numbers = #tpu.dot_dimension_numbers<[1], [0], [0], [1], [0, 0, 1, 1], [], []>} : vector<8x32xbf16>, vector<32x32xbf16>, vector<8x32xf32> -> vector<8x32xf32>
    %c0_53 = arith.constant 0 : index
    %c0_54 = arith.constant 0 : index
    %116 = vector.load %arg8[%c0_53, %c0_54] : memref<1x32xf32, #tpu.memory_space<vmem>>, vector<1x32xf32>
    %117 = vector.broadcast %116 : vector<1x32xf32> to vector<8x32xf32>
    %118 = arith.addf %115, %117 : vector<8x32xf32>
    %c0_55 = arith.constant 0 : index
    %c0_56 = arith.constant 0 : index
    %c0_57 = arith.constant 0 : index
    %119 = vector.load %arg9[%c0_55, %c0_56, %c0_57] : memref<1x8x32xf32, #tpu.memory_space<vmem>>, vector<1x8x32xf32>
    %120 = vector.shape_cast %119 : vector<1x8x32xf32> to vector<8x32xf32>
    %121 = vector.shape_cast %118 : vector<8x32xf32> to vector<1x8x32xf32>
    tpu.vector_store %arg9[%c0_55, %c0_56, %c0_57], %121 {strides = array<i32>} : memref<1x8x32xf32, #tpu.memory_space<vmem>>, vector<1x8x32xf32>,
    return
  }
  func.func @transform_0(%arg0: i32, %arg1: i32) -> (i32, i32, i32) {
    %c0_i32 = arith.constant 0 : i32
    %c0_i32_0 = arith.constant 0 : i32
    return %arg0, %arg1, %c0_i32 : i32, i32, i32
  }
  func.func @transform_1(%arg0: i32, %arg1: i32) -> (i32, i32, i32) {
    %c0_i32 = arith.constant 0 : i32
    %c0_i32_0 = arith.constant 0 : i32
    %c0_i32_1 = arith.constant 0 : i32
    return %arg0, %c0_i32, %c0_i32_0 : i32, i32, i32
  }
  func.func @transform_2(%arg0: i32, %arg1: i32) -> (i32, i32, i32) {
    %c0_i32 = arith.constant 0 : i32
    %c0_i32_0 = arith.constant 0 : i32
    %c0_i32_1 = arith.constant 0 : i32
    return %arg0, %c0_i32, %c0_i32_0 : i32, i32, i32
  }
  func.func @transform_3(%arg0: i32, %arg1: i32) -> (i32, i32, i32) {
    %c0_i32 = arith.constant 0 : i32
    %c0_i32_0 = arith.constant 0 : i32
    %c0_i32_1 = arith.constant 0 : i32
    %c0_i32_2 = arith.constant 0 : i32
    return %c0_i32, %c0_i32_0, %c0_i32_1 : i32, i32, i32
  }
  func.func @transform_4(%arg0: i32, %arg1: i32) -> (i32, i32, i32) {
    %c0_i32 = arith.constant 0 : i32
    %c0_i32_0 = arith.constant 0 : i32
    %c0_i32_1 = arith.constant 0 : i32
    %c0_i32_2 = arith.constant 0 : i32
    return %c0_i32, %c0_i32_0, %c0_i32_1 : i32, i32, i32
  }
  func.func @transform_5(%arg0: i32, %arg1: i32) -> (i32, i32) {
    %c0_i32 = arith.constant 0 : i32
    %c0_i32_0 = arith.constant 0 : i32
    %c0_i32_1 = arith.constant 0 : i32
    return %c0_i32, %c0_i32_0 : i32, i32
  }
  func.func @transform_6(%arg0: i32, %arg1: i32) -> (i32, i32) {
    %c0_i32 = arith.constant 0 : i32
    %c0_i32_0 = arith.constant 0 : i32
    %c0_i32_1 = arith.constant 0 : i32
    return %c0_i32, %c0_i32_0 : i32, i32
  }
  func.func @transform_7(%arg0: i32, %arg1: i32) -> (i32, i32, i32) {
    %c0_i32 = arith.constant 0 : i32
    %c0_i32_0 = arith.constant 0 : i32
    return %arg0, %arg1, %c0_i32 : i32, i32, i32
  }
}

</mosaic_0001>

<bundles_post_ra>
// kernel: tpu_custom_call.1
= control target key start
LH: loop header
LB: loop body
LE: loop exit
PB: predicated region body
PF: predicated region fallthrough
CT: control target
= control target key end

     0   :  { %s2208_s0 = inlined_call_operand.hbm [shape: f32[2,8,32], index: 0, kind: input, shape index: {}]   ;;  %s2209_s1 = inlined_call_operand.hbm [shape: f32[2,8,32], index: 1, kind: input, shape index: {}]   ;;  %s2210_s2 = inlined_call_operand.hbm [shape: f32[2,8,32], index: 2, kind: input, shape index: {}]   ;;  %s2211_s3 = inlined_call_operand.hbm [shape: bf16[3,32,32], index: 3, kind: input, shape index: {}]   ;;  %s2212_s4 = inlined_call_operand.vmem [shape: f32[3,1,32], index: 4, kind: input, shape index: {}]   ;;  %s2213_s5 = inlined_call_operand.hbm [shape: bf16[32,32], index: 5, kind: input, shape index: {}]   ;;  %s2214_s6 = inlined_call_operand.vmem [shape: f32[1,32], index: 6, kind: input, shape index: {}]   ;;  %s2215_s7 = inlined_call_operand.hbm [shape: f32[2,8,32], index: 7, kind: output, shape index: {}]  }
   0x1   :  { %2232 = sst [smem:[#allocation23_spill]] %s2209_s1 }
   0x2   :  { %2233 = sst [smem:[#allocation24_spill]] %s2211_s3 }
   0x3   :  { %2234 = sst [smem:[#allocation25_spill]] %s2215_s7 }
   0x4   :  { %12 = vsyncpa [#allocation4], 0 }
   0x5   :  { %14 = vsyncpa [#allocation4 + $0x1], 0 }
   0x6   :  { %15 = vsyncpa [#allocation7], 0 }
   0x7   :  { %17 = vsyncpa [#allocation7 + $0x1], 0 }
   0x8   :  { %18 = vsyncpa [#allocation10], 0 }
   0x9   :  { %19 = vsyncpa [#allocation5], 0 }
   0xa   :  { %21 = vsyncpa [#allocation5 + $0x1], 0  ;;  %s1875_s24 = smov 0   ;;  %s1877_s25 = smov 0  }
   0xb   :  { %s1879_s26 = smov 0   ;;  %s1881_s27 = smov 0  }
   0xc   :  { %s1883_s28 = smov 0   ;;  %s1885_s29 = smov 0  }
   0xd LB: > { %2235 = sst [smem:[#allocation17_spill]] %s1797_s24  ;;  %s1906_s30 = sadd.s32 4294967295, %s1817_s29   ;;  %s1817_s29 = sphi %s1885_s29, %s27_s29   ;;  %s1813_s28 = sphi %s1883_s28, %s2269_s28   ;;  %s1809_s27 = sphi %s1881_s27, %s2268_s27   ;;  %s1805_s26 = sphi %s1879_s26, %s2272_s26   ;;  %s1801_s25 = sphi %s1877_s25, %s2271_s25   ;;  %s1797_s24 = sphi %s1875_s24, %s2270_s24  }
   0xe   : > { %2236 = sst [smem:[#allocation18_spill]] %s1813_s28  ;;  %s1310_s8 = sadd.s32 4294967294, %s1817_s29  }
   0xf   : > { %2237 = sst [smem:[#allocation19_spill]] %s1817_s29  ;;  %p61_p0 = scmp.ne.s32.totalorder %s1801_s25, %s1797_s24 }
  0x10   : > { %p2224_p1 = scmp.eq.s32.totalorder %s1906_s30, 0  ;;  %p229_p3 = scmp.eq.s32.totalorder %s1310_s8, 1 }
  0x11   : > { %p1311_p5 = scmp.ge.s32.totalorder %s1817_s29, 1  ;;  %p236_p7 = scmp.lt.s32.totalorder %s1817_s29, 3 }
  0x12   : > { %p1915_p4 = por %p2224_p1, %p61_p0  ;;  %p1920_p6 = por %p229_p3, %p61_p0 }
  0x13   : > { %p1925_p8 = pnand %p1311_p5, %p236_p7  ;;  %s1819_s12 = smov [#allocation9]  }
  0x14   : > { %s2238_s9 = scalar_select %p1915_p4, 1, 0 }
  0x15   : > { %s2239_s10 = scalar_select %p1920_p6, 1, 0 }
  0x16   : > { %s2241_s11 = scalar_select %p1925_p8, 1, 0 }
  0x17   : > { %2240 = sst [smem:[#allocation20_spill]] %s2239_s10  ;;  %s248_s13 = sshll.u32 %s1819_s12, 4  ;;  %s249_s13 = int_to_ptr.vmem [resolvable:$true] %s248_s13 }
  0x18   : > { %p1482_p9 = pneg %p1925_p8  ;;  %s39_s15 = sadd.s32 1, %s1813_s28 }
  0x19   : > { %s1604_s16 = scalar_lea.vmem %s249_s13, 768  ;;  %p1612_p5 = scmp.lt.s32.totalorder %s249_s13, %s249_s13 }
  0x1a   : > { %p1934_p11 = pnand %p1482_p9, %p2224_p1  ;;  %p1605_p13 = scmp.ne.s32.totalorder %s249_s13, %s1604_s16 }
  0x1b   : > { %p1613_p7 = scmp.lt.s32.totalorder %s1604_s16, %s1604_s16 }
  0x1c   : > { %p2225_p12 = pneg %p1934_p11 }
  0x1d   : > { %p1614_p2 = por %p1613_p7, %p1612_p5 }
  0x1e   : > { %p1607_p0 = pnand %p1605_p13, %p2225_p12 }
  0x20   : > { %p1608_p3 = pneg %p1607_p0 }
  0x22   : > { %p1615_p10 = pnand %p1614_p2, %p1608_p3 }
  0x24   : > { %1618 = shalt.err (!%p1615_p10)
}
  0x25   : > { %s2216_s17 = smov 64   ;;  %s2217_s18 = smov 4  }
  0x26   : > { %s2243_s3 = sld [smem:[#allocation24_spill]]  ;;  %p41_p2 = scmp.ge.s32.totalorder %s39_s15, 2 }
  0x27   : > { %s48_s21 = sadd.s32 1, %s1805_s26  ;;  %p55_p9 = scmp.ne.s32.totalorder %s1805_s26, %s1801_s25 }
  0x28   : > { %p56_p10 = scmp.eq.s32.totalorder %s1817_s29, 0  ;;  %s2274_s15 = smov (%p41_p2, %s39_s15), 0 }
  0x29   : > { %2244 = sst [smem:[#allocation21_spill]] %s2274_s15  ;;  %p2245_p0 = scmp.eq.s32.totalorder %s1906_s30, 1 }
  0x2a   : > { %p57_p13 = por %p56_p10, %p55_p9  ;;  %s43_s23 = ssub.s32 %s1813_s28, %s2274_s15 }
  0x2b   : > { %p1960_p3 = por %p2245_p0, %p55_p9  ;;  %p1505_p5 = scmp.lt.s32.totalorder %s1817_s29, 2 }
  0x2c   : > { %1485 = dma.hbm_to_vmem [thread:$0]  (!%p1934_p11), %s2243_s3, 768, %s249_s13, [#allocation10], %s2216_s17, %s2216_s17, %s2217_s18  }
  0x2d   : > { %s2246_s22 = scalar_select %p1960_p3, 1, 0 }
  0x2e   : > { %p46_p7 = scmp.eq.s32.totalorder %s43_s23, 0  ;;  %s2218_s8 = sand.u32 1, %s1805_s26  }
  0x2f   : > { %s1970_s12 = sshll.u32 %s2218_s8, 3  ;;  %s1973_s13 = sshll.u32 %s1813_s28, 7 }
  0x30   : > { %s1976_s16 = scalar_select %p46_p7, %s1805_s26, %s48_s21  }
  0x31   : > { %p1978_p2 = pnand %p1505_p5, %p57_p13  ;;  %s300_s20 = sand.u32 1, %s1817_s29  }
  0x32   : > { %2247 = sst [smem:[#allocation22_spill]] %s1976_s16  ;;  %s304_s3 = scalar_lea.vmem [#allocation6], %s1970_s12 }
  0x33   : > { %s2249_s1 = sld [smem:[#allocation23_spill]]  ;;  %s311_s8 = sshll.u32 %s304_s3, 4  ;;  %s312_s8 = int_to_ptr.vmem [resolvable:$true] %s311_s8 }
  0x34   : > { %s1822_s15 = smov [#allocation11]   ;;  %s1988_s10 = scalar_lea.sflag [#allocation7], %s300_s20 }
  0x35   : > { %s264_s28 = sshll.u32 %s1822_s15, 4  ;;  %p2226_p9 = pneg %p1978_p2  ;;  %s265_s28 = int_to_ptr.vmem [resolvable:$true] %s264_s28 }
  0x36   : > { %s1632_s21 = scalar_lea.vmem %s312_s8, 128  ;;  %s1823_s16 = smov [#allocation6]  }
  0x37   : > { %p1633_p10 = scmp.ne.s32.totalorder %s312_s8, %s1632_s21  ;;  %s1637_s29 = sshll.u32 %s1823_s16, 4  ;;  %s1638_s29 = int_to_ptr.vmem [resolvable:$false] %s1637_s29 }
  0x38   : > { %s1639_s17 = scalar_lea.vmem %s1638_s29, 256  ;;  %p1640_p5 = scmp.lt.s32.totalorder %s312_s8, %s1638_s29 }
  0x39   : > { %s309_s23 = scalar_lea.hbm %s2249_s1, %s1973_s13  ;;  %p1635_p13 = pnand %p1633_p10, %p2226_p9 }
  0x3a   : > { %p1641_p7 = scmp.lt.s32.totalorder %s1639_s17, %s1632_s21 }
  0x3b   : > { %p1636_p0 = pneg %p1635_p13 }
  0x3c   : > { %p1642_p1 = por %p1641_p7, %p1640_p5 }
  0x3e   : > { %p1643_p12 = pnand %p1642_p1, %p1636_p0 }
  0x40   : > { %1646 = shalt.err (!%p1643_p12)
}
  0x41   : > { %1495 = dma.hbm_to_vmem [thread:$0]  (!%p1978_p2), %s309_s23, 128, %s312_s8, %s1988_s10  }
  0x42   : > { %s1658_s3 = scalar_lea.vmem %s265_s28, 256  ;;  %p2250_p10 = pneg %p1934_p11 }
  0x43   : > { %p1659_p6 = scmp.ne.s32.totalorder %s265_s28, %s1658_s3  ;;  %p1666_p3 = scmp.lt.s32.totalorder %s265_s28, %s265_s28 }
  0x44   : > { %p1667_p4 = scmp.lt.s32.totalorder %s1658_s3, %s1658_s3 }
  0x45   : > { %p1661_p13 = pnand %p1659_p6, %p2250_p10 }
  0x46   : > { %p1668_p8 = por %p1667_p4, %p1666_p3 }
  0x47   : > { %p1662_p9 = pneg %p1661_p13 }
  0x49   : > { %p1669_p5 = pnand %p1668_p8, %p1662_p9 }
  0x4b   : > { %1672 = shalt.err (!%p1669_p5)
}
  0x4c   : > { %s2251_s29 = smov 4   ;;  %s2252_s15 = smov 64  }
  0x4d   : > { %1488 = dma.hbm_to_vmem [thread:$0]  (!%p1934_p11), %s2213_s5, 256, %s265_s28, [#allocation10], %s2252_s15, %s2252_s15, %s2251_s29  }
  0x4e   : > { %s291_s23 = scalar_lea.hbm %s2208_s0, %s1973_s13  ;;  %s285_s21 = scalar_lea.vmem [#allocation3], %s1970_s12 }
  0x4f   : > { %s293_s17 = sshll.u32 %s285_s21, 4  ;;  %s327_s1 = scalar_lea.hbm %s2210_s2, %s1973_s13  ;;  %s294_s17 = int_to_ptr.vmem [resolvable:$true] %s293_s17 }
  0x50   : > { %s2253_s24 = sand.u32 1, %s1805_s26   ;;  %s1686_s18 = scalar_lea.vmem %s294_s17, 128 }
  0x51   : > { %s282_s7 = scalar_lea.sflag [#allocation4], %s2253_s24  ;;  %p1687_p1 = scmp.ne.s32.totalorder %s294_s17, %s1686_s18 }
  0x52   : > { %p2254_p4 = pneg %p1978_p2  ;;  %s1824_s28 = smov [#allocation3]  }
  0x53   : > { %s1691_s29 = sshll.u32 %s1824_s28, 4  ;;  %s1692_s29 = int_to_ptr.vmem [resolvable:$false] %s1691_s29 }
  0x54   : > { %p1689_p6 = pnand %p1687_p1, %p2254_p4  ;;  %s1693_s15 = scalar_lea.vmem %s1692_s29, 256 }
  0x55   : > { %p1694_p11 = scmp.lt.s32.totalorder %s294_s17, %s1692_s29  ;;  %p1695_p12 = scmp.lt.s32.totalorder %s1693_s15, %s1686_s18 }
  0x56   : > { %p1690_p8 = pneg %p1689_p6 }
  0x57   : > { %p1696_p3 = por %p1695_p12, %p1694_p11 }
  0x59   : > { %p1697_p9 = pnand %p1696_p3, %p1690_p8 }
  0x5b   : > { %1700 = shalt.err (!%p1697_p9)
}
  0x5c   : > { %1492 = dma.hbm_to_vmem [thread:$0]  (!%p1978_p2), %s291_s23, 128, %s294_s17, %s282_s7  }
  0x5d   : > { %s322_s24 = scalar_lea.vmem [#allocation8], %s1970_s12  ;;  %p2255_p7 = pmov %p2254_p4 }
  0x5e   : > { %s329_s16 = sshll.u32 %s322_s24, 4  ;;  %s1825_s20 = smov [#allocation8]   ;;  %s330_s16 = int_to_ptr.vmem [resolvable:$true] %s329_s16 }
  0x5f   : > { %s1714_s8 = scalar_lea.vmem %s330_s16, 128  ;;  %s1719_s21 = sshll.u32 %s1825_s20, 4  ;;  %s1720_s21 = int_to_ptr.vmem [resolvable:$false] %s1719_s21 }
  0x60   : > { %p1715_p0 = scmp.ne.s32.totalorder %s330_s16, %s1714_s8  ;;  %s1721_s14 = scalar_lea.vmem %s1720_s21, 256 }
  0x61   : > { %p1722_p5 = scmp.lt.s32.totalorder %s330_s16, %s1720_s21  ;;  %p1723_p1 = scmp.lt.s32.totalorder %s1721_s14, %s1714_s8 }
  0x62   : > { %p1717_p10 = pnand %p1715_p0, %p2255_p7 }
  0x63   : > { %p1724_p4 = por %p1723_p1, %p1722_p5 }
  0x64   : > { %p1718_p13 = pneg %p1717_p10 }
  0x66   : > { %p1725_p6 = pnand %p1724_p4, %p1718_p13 }
  0x68   : > { %1728 = shalt.err (!%p1725_p6)
}
  0x69   : > { %1498 = dma.hbm_to_vmem [thread:$0]  (!%p1978_p2), %s327_s1, 128, %s330_s16, %s1988_s10  }
  0x6a   : > { %p2256_p8 = scmp.ne.s32.totalorder %s2241_s11, 0 }
  0x6b   : > { %s2040_s23 = sand.u32 (!%p2256_p8), 1, %s1801_s25   ;;  %p2257_p11 = scmp.ne.s32.totalorder (!%p2256_p8), %s2238_s9, 0 }
  0x6c   : > { %338 = sbr.rel (%p2256_p8) target bundleno = 1347 (0x543), region = 48  ;;  %s2043_s17 = sshll.u32 (!%p2256_p8), %s2040_s23, 3 }
  0x6d   : > { %s341_s19 = scalar_lea.sflag (!%p2256_p8), [#allocation4], %s2040_s23  ;;  %s344_s3 = scalar_lea.vmem (!%p2256_p8), [#allocation3], %s2043_s17 }
  0x71   : > { %1780 = dma.done.wait (%p2257_p11), %s341_s19, 128  }
  0x72   : > { %1782 = vsyncadd (%p2257_p11), %s341_s19, 4294967168  ;;  %s349_s1 = sand.u32 1, %s1906_s30   ;;  %s353_s11 = scalar_lea.vmem [#allocation6], %s2043_s17 }
  0x73   : > { %s350_s10 = scalar_lea.sflag [#allocation7], %s349_s1 }
  0x74   : > { %1784 = dma.done.wait (%p2257_p11), %s350_s10, 256  }
  0x75   : > { %1786 = vsyncadd (%p2257_p11), %s350_s10, 4294967040  ;;  %s362_s13 = scalar_lea.vmem [#allocation8], %s2043_s17  ;;  %p2258_p2 = scmp.eq.s32.totalorder %s1906_s30, 0 }
  0x77   : > { %1788 = dma.done.wait (%p2258_p2), [#allocation10], 1024   ;;  %p2259_p12 = pmov %p2258_p2 }
  0x78   : > { %v1826_v0 = vmov 0.0   ;;  %vm1827_vm0 = vmmov 0   ;;  %v1569_v1 = vld [vmem:[#allocation9 + $0x8] sm:$0xff]   ;;  %v1570_v2 = vld [vmem:[#allocation9 + $0x18] sm:$0xff]   ;;  %v1571_v3 = vld [vmem:[#allocation9] sm:$0xff]   ;;  %vm437_vm1 = vcmask 261120  }
  0x79   : > { %1790 = vsyncadd (%p2259_p12), [#allocation10], 4294966272  ;;  %1386 = vmatprep.subr.bf16.mxu0 %v1826_v0  ;;  %1394 = vmatprep.subr.bf16.mxu1 %v1826_v0  ;;  %v1572_v4 = vld [vmem:[#allocation9 + $0x10] sm:$0xff]   ;;  %v482_v6 = vld [vmem:[%s353_s11] sm:$0xff]  ;;  %vm624_vm2 = vcmask 64512   ;;  %s1828_s29 = smov 112  }
  0x7a   : > { %1390 = vmatprep.mubr.msk.bf16.mxu0 %vm1827_vm0, %v1826_v0  ;;  %1398 = vmatprep.mubr.msk.bf16.mxu1 %vm1827_vm0, %v1826_v0  ;;  %v412_v5 = vld [vmem:[%s344_s3] sm:$0xff]  ;;  %v483_v8 = vpack.c.bf16 %v482_v6, %v482_v6  ;;  %v1328_v9 = vld [vmem:[%s2212_s4] ss:$0 sm:$0xff]  ;;  %v1333_v10 = vld [vmem:[%s2212_s4 + $0x1] ss:$0 sm:$0xff]  ;;  %s1829_s15 = smov 120  }
  0x7b   : > { %1387 = vmatpush3.bf16.msra.mxu0 %v1569_v1  ;;  %1395 = vmatpush3.bf16.msra.mxu1 %v1570_v2  ;;  %v413_v7 = vpack.c.bf16 %v412_v5, %v412_v5  ;;  %s1830_s24 = smov 104   ;;  %v1573_v25 = vld [vmem:[#allocation9 + $0x28] sm:$0xff]   ;;  %v1574_v26 = vld [vmem:[#allocation9 + $0x20] sm:$0xff]   ;;  %v552_v27 = vld [vmem:[%s362_s13] sm:$0xff]  ;;  %vm685_vm3 = vcmask 1043456   ;;  %s1831_s20 = smov 8  }
  0x7c   : > { %1388 = vmatprep.subr.bf16.mxu0 %v1826_v0  ;;  %1396 = vmatprep.subr.bf16.mxu1 %v1826_v0  ;;  %v553_v28 = vpack.c.bf16 %v552_v27, %v552_v27  ;;  %v1338_v43 = vld [vmem:[%s2212_s4 + $0x2] ss:$0 sm:$0xff]  ;;  %s1832_s21 = smov 16   ;;  %s1833_s14 = smov 24   ;;  %vm849_vm4 = vcmask 130112   ;;  %vm965_vm5 = vcmask 195712  }
  0x7d   : > { %vm1081_vm6 = vcmask 261312   ;;  %s1355_s19 = sshll.u32 %s1809_s27, 7  ;;  %s410_s3 = scalar_lea.vmem [#allocation12], %s2043_s17 }
  0x7e   : > { %s1167_s1 = sshll.u32 %s410_s3, 4  ;;  %s2260_s13 = sld [smem:[#allocation25_spill]]  ;;  %s2161_s1 = int_to_ptr.vmem [resolvable:$true] %s1167_s1 }
  0x7f   : > { %1389 = vmatpush3.bf16.msra.mxu0 %v1571_v3  ;;  %1397 = vmatpush3.bf16.msra.mxu1 %v1572_v4  ;;  %s1153_s9 = scalar_lea.sflag [#allocation5], %s2040_s23  ;;  %s1729_s27 = scalar_lea.vmem %s2161_s1, 128 }
  0x80   : > { %1402 = vmatprep.subr.bf16.mxu0 %v1826_v0  ;;  %1410 = vmatprep.subr.bf16.mxu1 %v1826_v0  ;;  %p1730_p3 = scmp.ne.s32.totalorder %s2161_s1, %s1729_s27  ;;  %p2261_p9 = scmp.ne.s32.totalorder %s2246_s22, 0 }
  0x81   : > { %s1834_s17 = smov [#allocation12]  }
  0x82   : > { %1391 = vmatmul.mubr.msk.bf16.vlgmr.msra.gmra.mxu0 %vm437_vm1, %v413_v7  ;;  %1399 = vmatmul.mubr.msk.bf16.vlgmr.msra.gmra.mxu1 %vm437_vm1, %v483_v8  ;;  %p1731_p0 = pnand %p1730_p3, %p2261_p9  ;;  %s1733_s18 = sshll.u32 %s1834_s17, 4  ;;  %s1734_s18 = int_to_ptr.vmem [resolvable:$false] %s1733_s18 }
  0x83   : > { %1406 = vmatprep.mubr.msk.bf16.mxu0 %vm1827_vm0, %v1826_v0  ;;  %1412 = vmatprep.mubr.msk.bf16.mxu1 %vm1827_vm0, %v1826_v0  ;;  %s1735_s28 = scalar_lea.vmem %s1734_s18, 256  ;;  %p1736_p10 = scmp.lt.s32.totalorder %s2161_s1, %s1734_s18 }
  0x84   : > { %1403 = vmatpush3.bf16.msra.mxu0 %v1573_v25  ;;  %s2159_s30 = scalar_lea.hbm %s2260_s13, %s1355_s19  ;;  %p1732_p7 = pneg %p1731_p0 }
  0x85   : > { %1404 = vmatprep.subr.bf16.mxu0 %v1826_v0  ;;  %p1737_p13 = scmp.lt.s32.totalorder %s1735_s28, %s1729_s27 }
  0x87   : > { %p1738_p5 = por %p1737_p13, %p1736_p10 }
  0x88   : > { %1405 = vmatpush3.bf16.msra.mxu0 %v1574_v26 }
  0x89   : > { %1416 = vmatprep.subr.bf16.mxu0 %v1826_v0  ;;  %p1739_p1 = pnand %p1738_p5, %p1732_p7 }
  0x8b   : > { %1407 = vmatmul.mubr.msk.bf16.vlgmr.msra.gmra.mxu0 %vm437_vm1, %v553_v28 }
  0x8c   : > { %1418 = vmatprep.mubr.msk.bf16.mxu0 %vm1827_vm0, %v1826_v0 }
 0x142   : > { %v475_v11 = vpop.f32.mrf.mxu0  ;;  %v546_v13 = vpop.f32.mrf.mxu1 }
 0x143   : > { %v476_v12 = vadd.f32 %v1328_v9, %v475_v11  ;;  %v547_v14 = vadd.f32 %v1333_v10, %v546_v13 }
 0x144   : > { %v1392_v15 = vpop.f32.mrf.mxu0  ;;  %v1400_v17 = vpop.f32.mrf.mxu1 }
 0x145   : > { %v481_v16 = vmul.f32 0.35355338, %v476_v12  ;;  %v623_v18 = vpack.c.bf16 %v547_v14, %v547_v14 }
 0x146   : > { %v478_v19 = vpop.f32.mrf.mxu0  ;;  %v549_v20 = vpop.f32.mrf.mxu1 }
 0x147   : > { %v622_v21 = vpack.c.bf16 %v481_v16, %v481_v16  ;;  %853 = vrot.lane.b32.xlu1 %v623_v18, %s1828_s29  ;;  %736 = vrot.lane.b32.xlu0 %v623_v18, %s1829_s15  ;;  %v629_v23 = vsel %vm624_vm2, %v623_v18, 0 }
 0x148   : > { %v1393_v22 = vpop.f32.mrf.mxu0  ;;  %v1401_v24 = vpop.f32.mrf.mxu1  ;;  %1411 = vmatpush3.bf16.xpose.msra.mxu1 %v629_v23 }
 0x149   : > { %1422 = vmatprep.subr.bf16.mxu1 %v1826_v0 }
 0x14b   : > { %851 = vrot.lane.b32.xlu1 %v622_v21, %s1828_s29  ;;  %733 = vrot.lane.b32.xlu0 %v622_v21, %s1829_s15  ;;  %v616_v44 = vpop.f32.mrf.mxu0 }
 0x14c   : > { %v617_v45 = vadd.f32 %v1338_v43, %v616_v44 }
 0x14d   : > { %v1408_v46 = vpop.f32.mrf.mxu0 }
 0x14e   : > { %v681_v47 = vpack.c.bf16 %v617_v45, %v617_v45 }
 0x14f   : > { %967 = vrot.lane.b32.xlu1 %v622_v21, %s1830_s24  ;;  %969 = vrot.lane.b32.xlu0 %v623_v18, %s1830_s24  ;;  %v619_v48 = vpop.f32.mrf.mxu0 }
 0x150   : > { %1413 = vmatmul.mubr.msk.bf16.vlgmr.msra.gmra.mxu1 %vm624_vm2, %v622_v21  ;;  %v687_v49 = vsel %vm685_vm3, %v681_v47, 0 }
 0x151   : > { %1424 = vmatprep.mubr.msk.bf16.mxu1 %vm1827_vm0, %v1826_v0  ;;  %v1409_v50 = vpop.f32.mrf.mxu0  ;;  %1417 = vmatpush3.bf16.msra.mxu0 %v687_v49  ;;  %v1575_v49 = vld [vmem:[#allocation11 + $0x8] sm:$0xff]  }
 0x152   : > { %1428 = vmatprep.subr.bf16.mxu0 %v1826_v0 }
 0x1b9   : > { %v737_v29 = vpop.permute.xlu0 %736  ;;  %v854_v31 = vpop.permute.xlu1 %853 }
 0x1ba   : > { %v742_v30 = vsel %vm624_vm2, %v737_v29, 0  ;;  %v859_v33 = vsel %vm624_vm2, %v854_v31, 0 }
 0x1bb   : > { %1423 = vmatpush3.bf16.xpose.msra.mxu1 %v742_v30 }
 0x1bc   : > { %1434 = vmatprep.subr.bf16.mxu1 %v1826_v0 }
 0x1bd   : > { %v734_v32 = vpop.permute.xlu0 %733  ;;  %v852_v35 = vpop.permute.xlu1 %851 }
 0x1c1   : > { %v970_v34 = vpop.permute.xlu0 %969  ;;  %v968_v37 = vpop.permute.xlu1 %967 }
 0x1c2   : > { %1425 = vmatmul.mubr.msk.bf16.vlgmr.msra.gmra.mxu1 %vm624_vm2, %v734_v32  ;;  %v975_v36 = vsel %vm624_vm2, %v970_v34, 0 }
 0x1c3   : > { %1435 = vmatpush3.bf16.xpose.msra.mxu1 %v859_v33  ;;  %1436 = vmatprep.mubr.msk.bf16.mxu1 %vm1827_vm0, %v1826_v0 }
 0x1c4   : > { %1446 = vmatprep.subr.bf16.mxu1 %v1826_v0 }
 0x1ca   : > { %1437 = vmatmul.mubr.msk.bf16.vlgmr.msra.gmra.mxu1 %vm624_vm2, %v852_v35 }
 0x1cb   : > { %1447 = vmatpush3.bf16.xpose.msra.mxu1 %v975_v36  ;;  %1448 = vmatprep.mubr.msk.bf16.mxu1 %vm1827_vm0, %v1826_v0 }
 0x1cc   : > { %1458 = vmatprep.subr.bf16.mxu1 %v1826_v0 }
 0x1d2   : > { %1449 = vmatmul.mubr.msk.bf16.vlgmr.msra.gmra.mxu1 %vm624_vm2, %v968_v37 }
 0x1d3   : > { %1462 = vmatprep.mubr.msk.bf16.mxu1 %vm1827_vm0, %v1826_v0  ;;  %1459 = vmatpush3.bf16.msra.mxu1 %v1575_v49 }
 0x1d4   : > { %1460 = vmatprep.subr.bf16.mxu1 %v1826_v0 }
 0x210   : > { %v665_v38 = vpop.f32.mrf.mxu1 }
 0x211   : > { %v671_v39 = vsel %vm624_vm2, %v665_v38, -inf }
 0x212   : > { %672 = vmax.xlane.f32.xlu0 %v671_v39  ;;  %v1414_v40 = vpop.f32.mrf.mxu1 }
 0x214   : > { %v668_v41 = vpop.f32.mrf.mxu1 }
 0x216   : > { %v1415_v42 = vpop.f32.mrf.mxu1 }
 0x282   : > { %v778_v51 = vpop.f32.mrf.mxu1 }
 0x283   : > { %v784_v52 = vsel %vm624_vm2, %v778_v51, -inf }
 0x284   : > { %785 = vmax.xlane.f32.xlu1 %v784_v52  ;;  %v1426_v53 = vpop.f32.mrf.mxu1  ;;  %v1576_v52 = vld [vmem:[#allocation11] sm:$0xff]  }
 0x285   : > { %1461 = vmatpush3.bf16.msra.mxu1 %v1576_v52 }
 0x286   : > { %v781_v54 = vpop.f32.mrf.mxu1 }
 0x288   : > { %v1427_v55 = vpop.f32.mrf.mxu1 }
 0x28a   : > { %v895_v56 = vpop.f32.mrf.mxu1 }
 0x28b   : > { %v901_v57 = vsel %vm624_vm2, %v895_v56, -inf }
 0x28c   : > { %902 = vmax.xlane.f32.xlu0 %v901_v57  ;;  %v1438_v58 = vpop.f32.mrf.mxu1 }
 0x28e   : > { %v898_v59 = vpop.f32.mrf.mxu1 }
 0x290   : > { %v1439_v60 = vpop.f32.mrf.mxu1 }
 0x292   : > { %v1011_v61 = vpop.f32.mrf.mxu1 }
 0x293   : > { %v1017_v62 = vsel %vm624_vm2, %v1011_v61, -inf }
 0x294   : > { %1018 = vmax.xlane.f32.xlu0 %v1017_v62  ;;  %v1450_v63 = vpop.f32.mrf.mxu1 }
 0x295   : > { %795 = vrot.lane.b32.xlu1 %v681_v47, %s1829_s15 }
 0x296   : > { %v1014_v1 = vpop.f32.mrf.mxu1 }
 0x298   : > { %v1451_v2 = vpop.f32.mrf.mxu1 }
 0x299   : > { %1027 = vrot.lane.b32.xlu1 %v681_v47, %s1830_s24 }
 0x29b   : > { %v673_v3 = vpop.xlane.xlu0 %672 }
 0x29c   : > { %v674_v4 = vsub.f32 %v665_v38, %v673_v3 }
 0x29e   : > { %v675_v5 = vmul.f32 1.442695, %v674_v4  ;;  %v1350_v4 = vld [vmem:[%s2214_s6] ss:$0 sm:$0xff] }
 0x2a0   : > { %1577 = vpow2.f32 %v675_v5 }
 0x2aa   : > { %911 = vrot.lane.b32.xlu0 %v681_v47, %s1828_s29 }
 0x2ad   : > { %v1578_v6 = vpop.eup %1577 }
 0x2ae   : > { %v680_v7 = vpack.c.bf16 %v1578_v6, %v1578_v6  ;;  %v677_v24 = vsel %vm624_vm2, %v1578_v6, 0.0 }
 0x2b0   : > { %1419 = vmatmul.mubr.msk.bf16.vlgmr.msra.gmra.mxu0 %vm624_vm2, %v680_v7 }
 0x2b1   : > { %1430 = vmatprep.mubr.msk.bf16.mxu0 %vm1827_vm0, %v1826_v0 }
 0x30d   : > { %v786_v8 = vpop.xlane.xlu1 %785 }
 0x30e   : > { %v787_v9 = vsub.f32 %v778_v51, %v786_v8 }
 0x310   : > { %v788_v10 = vmul.f32 1.442695, %v787_v9 }
 0x311   : > { %v796_v11 = vpop.permute.xlu1 %795 }
 0x312   : > { %1579 = vpow2.f32 %v788_v10  ;;  %v801_v12 = vsel %vm685_vm3, %v796_v11, 0 }
 0x313   : > { %1429 = vmatpush3.bf16.msra.mxu0 %v801_v12 }
 0x314   : > { %1440 = vmatprep.subr.bf16.mxu0 %v1826_v0 }
 0x315   : > { %v903_v13 = vpop.xlane.xlu0 %902  ;;  %v1028_v26 = vpop.permute.xlu1 %1027 }
 0x316   : > { %v904_v14 = vsub.f32 %v895_v56, %v903_v13  ;;  %v1033_v29 = vsel %vm685_vm3, %v1028_v26, 0 }
 0x318   : > { %v905_v15 = vmul.f32 1.442695, %v904_v14 }
 0x31a   : > { %1581 = vpow2.f32 %v905_v15 }
 0x31d   : > { %v1019_v16 = vpop.xlane.xlu0 %1018 }
 0x31e   : > { %v1020_v17 = vsub.f32 %v1011_v61, %v1019_v16 }
 0x31f   : > { %v1580_v18 = vpop.eup %1579 }
 0x320   : > { %v1021_v19 = vmul.f32 1.442695, %v1020_v17  ;;  %v790_v20 = vsel %vm624_vm2, %v1580_v18, 0.0  ;;  %v793_v21 = vpack.c.bf16 %v1580_v18, %v1580_v18 }
 0x321   : > { %v912_v22 = vpop.permute.xlu0 %911  ;;  %791 = vadd.xlane.f32.xlu1 %v790_v20 }
 0x322   : > { %1583 = vpow2.f32 %v1021_v19  ;;  %v917_v23 = vsel %vm685_vm3, %v912_v22, 0  ;;  %1431 = vmatmul.mubr.msk.bf16.vlgmr.msra.gmra.mxu0 %vm624_vm2, %v793_v21 }
 0x323   : > { %1441 = vmatpush3.bf16.msra.mxu0 %v917_v23  ;;  %1442 = vmatprep.mubr.msk.bf16.mxu0 %vm1827_vm0, %v1826_v0 }
 0x324   : > { %1452 = vmatprep.subr.bf16.mxu0 %v1826_v0 }
 0x325   : > { %678 = vadd.xlane.f32.xlu1 %v677_v24 }
 0x327   : > { %v1582_v25 = vpop.eup %1581 }
 0x328   : > { %v907_v27 = vsel %vm624_vm2, %v1582_v25, 0.0  ;;  %v910_v28 = vpack.c.bf16 %v1582_v25, %v1582_v25 }
 0x329   : > { %908 = vadd.xlane.f32.xlu0 %v907_v27 }
 0x32a   : > { %1443 = vmatmul.mubr.msk.bf16.vlgmr.msra.gmra.mxu0 %vm624_vm2, %v910_v28 }
 0x32b   : > { %1453 = vmatpush3.bf16.msra.mxu0 %v1033_v29  ;;  %1454 = vmatprep.mubr.msk.bf16.mxu0 %vm1827_vm0, %v1826_v0 }
 0x32f   : > { %v1584_v30 = vpop.eup %1583 }
 0x330   : > { %v1023_v31 = vsel %vm624_vm2, %v1584_v30, 0.0  ;;  %v1026_v32 = vpack.c.bf16 %v1584_v30, %v1584_v30 }
 0x331   : > { %1024 = vadd.xlane.f32.xlu0 %v1023_v31 }
 0x332   : > { %1455 = vmatmul.mubr.msk.bf16.vlgmr.msra.gmra.mxu0 %vm624_vm2, %v1026_v32 }
 0x370   : > { %v723_v33 = vpop.f32.mrf.mxu0 }
 0x372   : > { %v1420_v34 = vpop.f32.mrf.mxu0 }
 0x374   : > { %v726_v35 = vpop.f32.mrf.mxu0 }
 0x376   : > { %v1421_v36 = vpop.f32.mrf.mxu0 }
 0x3aa   : > { %v792_v37 = vpop.xlane.xlu1 %791 }
 0x3ae   : > { %v679_v38 = vpop.xlane.xlu1 %678 }
 0x3af   : > { %1585 = vrcp.f32 %v679_v38 }
 0x3b0   : > { %1587 = vrcp.f32 %v792_v37 }
 0x3b2   : > { %v909_v41 = vpop.xlane.xlu0 %908 }
 0x3b3   : > { %1589 = vrcp.f32 %v909_v41 }
 0x3ba   : > { %v1025_v43 = vpop.xlane.xlu0 %1024 }
 0x3bb   : > { %1591 = vrcp.f32 %v1025_v43 }
 0x3bc   : > { %v1586_v39 = vpop.eup %1585 }
 0x3bd   : > { %v730_v40 = vmul.f32 %v1586_v39, %v723_v33  ;;  %v1588_v42 = vpop.eup %1587 }
 0x3bf   : > { %731 = vst.msk [vmem:[#allocation2] sm:$0xff] %vm624_vm2, %v730_v40 }
 0x3c0   : > { %v1590_v50 = vpop.eup %1589 }
 0x3c8   : > { %v1592_v57 = vpop.eup %1591 }
 0x3e2   : > { %v837_v44 = vpop.f32.mrf.mxu0 }
 0x3e3   : > { %v844_v45 = vmul.f32 %v1588_v42, %v837_v44 }
 0x3e4   : > { %v1432_v46 = vpop.f32.mrf.mxu0 }
 0x3e5   : > { %846 = vrot.lane.b32.xlu0 %v844_v45, %s1831_s20 }
 0x3e6   : > { %v840_v47 = vpop.f32.mrf.mxu0 }
 0x3e8   : > { %v1433_v48 = vpop.f32.mrf.mxu0 }
 0x3ea   : > { %v953_v51 = vpop.f32.mrf.mxu0 }
 0x3eb   : > { %v960_v53 = vmul.f32 %v1590_v50, %v953_v51 }
 0x3ec   : > { %v1444_v54 = vpop.f32.mrf.mxu0 }
 0x3ed   : > { %962 = vrot.lane.b32.xlu1 %v960_v53, %s1832_s21 }
 0x3ee   : > { %v956_v55 = vpop.f32.mrf.mxu0 }
 0x3f0   : > { %v1445_v56 = vpop.f32.mrf.mxu0 }
 0x3f2   : > { %v1069_v58 = vpop.f32.mrf.mxu0 }
 0x3f3   : > { %v1076_v59 = vmul.f32 %v1592_v57, %v1069_v58 }
 0x3f4   : > { %v1456_v60 = vpop.f32.mrf.mxu0 }
 0x3f5   : > { %1078 = vrot.lane.b32.xlu1 %v1076_v59, %s1833_s14 }
 0x3f6   : > { %v1072_v61 = vpop.f32.mrf.mxu0 }
 0x3f8   : > { %v1457_v62 = vpop.f32.mrf.mxu0 }
 0x457   : > { %v847_v63 = vpop.permute.xlu0 %846 }
 0x458   : > { %850 = vst.msk [vmem:[#allocation2] sm:$0xff] %vm849_vm4, %v847_v63 }
 0x45f   : > { %v963_v0 = vpop.permute.xlu1 %962 }
 0x460   : > { %966 = vst.msk [vmem:[#allocation2] sm:$0xff] %vm965_vm5, %v963_v0 }
 0x467   : > { %v1079_v1 = vpop.permute.xlu1 %1078 }
 0x468   : > { %1082 = vst.msk [vmem:[#allocation2] sm:$0xff] %vm1081_vm6, %v1079_v1 }
 0x46f   : > { %v1083_v2 = vld [vmem:[#allocation2] sm:$0xff] }
 0x470   : > { %v1084_v3 = vpack.c.bf16 %v1083_v2, %v1083_v2 }
 0x472   : > { %1463 = vmatmul.mubr.msk.bf16.vlgmr.msra.gmra.mxu1 %vm437_vm1, %v1084_v3 }
 0x532   : > { %v1145_v5 = vpop.f32.mrf.mxu1 }
 0x533   : > { %v1146_v6 = vadd.f32 %v1350_v4, %v1145_v5 }
 0x534   : > { %v1464_v7 = vpop.f32.mrf.mxu1 }
 0x535   : > { %1151 = vst.msk [vmem:[%s410_s3] sm:$0xff] %vm437_vm1, %v1146_v6 }
 0x536   : > { %v1148_v8 = vpop.f32.mrf.mxu1 }
 0x537   : > { %1742 = shalt.err (!%p1739_p1)
}
 0x538   : > { %s1743_s29 = scalar_lea.hbm %s2159_s30, 128  ;;  %s1747_s24 = scalar_lea.hbm %s2260_s13, 256 }
 0x539   : > { %p1744_p4 = scmp.ne.s32.totalorder %s2159_s30, %s1743_s29  ;;  %p1748_p11 = scmp.lt.s32.totalorder %s2159_s30, %s2260_s13 }
 0x53a   : > { %p1749_p2 = scmp.lt.s32.totalorder %s1747_s24, %s1743_s29 }
 0x53b   : > { %p1745_p6 = pnand %p1744_p4, %p2261_p9 }
 0x53c   : > { %p1750_p12 = por %p1749_p2, %p1748_p11 }
 0x53d   : > { %p1746_p8 = pneg %p1745_p6 }
 0x53f   : > { %p1751_p3 = pnand %p1750_p12, %p1746_p8 }
 0x541   : > { %1754 = shalt.err (!%p1751_p3)
}
 0x542   : > { %1480 = dma.vmem_to_hbm [thread:$0]  (%p2261_p9), %s2161_s1, 128, %s2159_s30, %s1153_s9   ;;  %v1465_v9 = vpop.f32.mrf.mxu1 }
 0x543 PF: > { %s2262_s20 = sld [smem:[#allocation17_spill]] }
 0x544   : > { %s2263_s21 = sld [smem:[#allocation20_spill]] }
 0x545   : > { %s2264_s14 = sld [smem:[#allocation19_spill]] }
 0x549   : > { %s1179_s7 = sand.u32 1, %s2262_s20  }
 0x54a   : > { %p2265_p0 = scmp.ne.s32.totalorder %s2263_s21, 0  ;;  %s1180_s12 = scalar_lea.sflag [#allocation5], %s1179_s7 }
 0x54b   : > { %p2266_p7 = scmp.ge.s32.totalorder %s2264_s14, 2 }
 0x54d   : > { %p1500_p10 = pnand %p2266_p7, %p2265_p0 }
 0x54f   : > { %p1501_p13 = pneg %p1500_p10 }
 0x551   : > { %1792 = dma.done.wait (%p1501_p13), %s1180_s12, 128  }
 0x552   : > { %1794 = vsyncadd (%p1501_p13), %s1180_s12, 4294967168  ;;  %s27_s29 = sadd.s32 1, %s2264_s14   ;;  %s2267_s22 = sld [smem:[#allocation22_spill]] }
 0x553   : > { %p24_p5 = scmp.ge.s32.totalorder %s27_s29, 4   ;;  %s2268_s27 = sld [smem:[#allocation18_spill]] }
 0x554   : > { %s2269_s28 = sld [smem:[#allocation21_spill]]  ;;  %s2270_s24 = smov %s1801_s25 }
 0x555   : > { %s2271_s25 = smov %s1805_s26  ;;  %26 = sbr.rel (!%p24_p5) target bundleno = 13 (0xd), region = 129 }
 0x558   : > { %s2272_s26 = smov %s2267_s22 }
 0x55a   :  { %1185 = vsyncpa [#allocation4], 1 }
 0x55b   :  { %1187 = vsyncpa [#allocation4 + $0x1], 1 }
 0x55c   :  { %1188 = vsyncpa [#allocation7], 1 }
 0x55d   :  { %1190 = vsyncpa [#allocation7 + $0x1], 1 }
 0x55e   :  { %1191 = vsyncpa [#allocation10], 1 }
 0x55f   :  { %1192 = vsyncpa [#allocation5], 1 }
 0x560   :  { %1194 = vsyncpa [#allocation5 + $0x1], 1 }

</bundles_post_ra>
